<compile_context>
chip_gen: v5e
topology: v5e:2x2
jax: 0.10.0
libtpu: 0.0.40
codegen_flags: <defaults>
</compile_context>

<pallas_src>
import functools

import jax
import jax.numpy as jnp
from jax.experimental import pallas as pl
from jax.experimental.pallas import tpu as pltpu


def autopad(k, p=None):
    if p is None:
        p = k // 2 if isinstance(k, int) else [x // 2 for x in k]
    return p


def _round_up(x, m):
    return (x + m - 1) // m * m


def _extract_patches(xp, k, h_out, w_out, s):
    """im2col: (N, Hp, Wp, C1) -> (N, Hout, Wout, k*k*C1), tap-major / channel-minor."""
    cols = []
    for kh in range(k):
        for kw in range(k):
            cols.append(xp[:, kh:kh + (h_out - 1) * s + 1:s,
                           kw:kw + (w_out - 1) * s + 1:s, :])
    return jnp.concatenate(cols, axis=-1)


def _conv_stats_kernel(p_ref, w_ref, y_ref, sum_ref, ssq_ref):
    """One bf16 MXU matmul per row-block + per-block f32 channel sum / sum-of-squares."""
    acc = jnp.dot(p_ref[...], w_ref[...], preferred_element_type=jnp.float32)
    y_ref[...] = acc.astype(y_ref.dtype)
    # Independent per-block partial stats (no resident accumulator -> grid axis stays
    # "parallel" and can shard across both TensorCores on v7x).
    sum_ref[...] = jnp.sum(acc, axis=0, keepdims=True).reshape(sum_ref.shape)
    ssq_ref[...] = jnp.sum(acc * acc, axis=0, keepdims=True).reshape(ssq_ref.shape)


def _bn_act_kernel(y_ref, scale_ref, bias_ref, o_ref, *, apply_mish):
    """Folded BN (scale/bias) + Mish using a single exp per element; bf16 store."""
    z = y_ref[...].astype(jnp.float32) * scale_ref[...] + bias_ref[...]
    if apply_mish:
        # mish(z) = z * tanh(softplus(z)) = z * ((1+e^z)^2 - 1) / ((1+e^z)^2 + 1)
        # overflow guard: for z > 20, tanh(softplus(z)) == 1 in f32.
        e = jnp.exp(jnp.minimum(z, 20.0))
        t = 1.0 + e
        n = t * t
        tanh_sp = (n - 1.0) * pl.reciprocal(n + 1.0, approx=True)
        z = jnp.where(z > 20.0, z, z * tanh_sp)
    o_ref[...] = z.astype(o_ref.dtype)


def conv_bn_mish(x_nchw, weight, gamma, beta, *, k=1, s=1, p=None, eps=1e-5,
                 act=True, block_rows=512):
    """Forward of Slimneck `Conv` (groups=1). x_nchw: (N, C1, H, W), weight: (C2, C1, k, k)."""
    p = autopad(k, p)
    N, C1, H, W = x_nchw.shape
    C2 = weight.shape[0]
    K = int(k)
    Hout = (H + 2 * p - K) // s + 1
    Wout = (W + 2 * p - K) // s + 1

    # ---- wrapper glue: NCHW -> NHWC, zero pad, im2col — all in bf16 (halves glue traffic) ----
    x = jnp.transpose(x_nchw, (0, 2, 3, 1)).astype(jnp.bfloat16)
    xp = jnp.pad(x, ((0, 0), (p, p), (p, p), (0, 0)))

    KKC1 = K * K * C1
    M = N * Hout * Wout
    patches = _extract_patches(xp, K, Hout, Wout, s).reshape(M, KKC1)

    # PyTorch weight (C2, C1, kh, kw) -> (kh, kw, C1, C2) -> (K*K*C1, C2)
    w_mat = jnp.transpose(weight, (2, 3, 1, 0)).astype(jnp.bfloat16).reshape(KKC1, C2)

    # Padding: lane-dense outputs, 128-aligned contraction, 16-aligned (bf16) row tiles.
    C2p = _round_up(C2, 128)
    KKC1p = _round_up(KKC1, 128)
    TM = max(16, min(_round_up(block_rows, 16), _round_up(M, 16)))
    Mp = _round_up(M, TM)
    n_blocks = Mp // TM

    patches = jnp.pad(patches, ((0, Mp - M), (0, KKC1p - KKC1)))
    w_mat = jnp.pad(w_mat, ((0, KKC1p - KKC1), (0, C2p - C2)))

    # ---- Pallas pass 1: conv matmul (bf16 MXU, f32 acc) + per-block f32 batch stats ----
    conv_call = pl.pallas_call(
        _conv_stats_kernel,
        out_shape=(
            jax.ShapeDtypeStruct((Mp, C2p), jnp.bfloat16),          # conv output y
            jax.ShapeDtypeStruct((n_blocks, 1, C2p), jnp.float32),  # per-block channel sum
            jax.ShapeDtypeStruct((n_blocks, 1, C2p), jnp.float32),  # per-block channel sumsq
        ),
        grid=(n_blocks,),
        in_specs=[
            pl.BlockSpec((TM, KKC1p), lambda i: (i, 0)),
            pl.BlockSpec((KKC1p, C2p), lambda i: (0, 0)),            # weights stay resident
        ],
        out_specs=(
            pl.BlockSpec((TM, C2p), lambda i: (i, 0)),
            pl.BlockSpec((1, 1, C2p), lambda i: (i, 0, 0)),
            pl.BlockSpec((1, 1, C2p), lambda i: (i, 0, 0)),
        ),
        compiler_params=pltpu.CompilerParams(
            dimension_semantics=("parallel",),        # fully independent blocks (megacore-able)
            vmem_limit_bytes=40 * 1024 * 1024,        # headroom under v7x's 64 MiB/TC
        ),
    )
    y_bf16, part_sum, part_ssq = conv_call(patches, w_mat)

    # ---- O(n_blocks * C2) BatchNorm folding from the partial stats (train-mode, biased var) ----
    count = float(M)   # zero-padded rows contribute exactly 0 to sum/sumsq, so count is exact
    ch_sum = jnp.sum(part_sum[:, 0, :], axis=0)
    ch_ssq = jnp.sum(part_ssq[:, 0, :], axis=0)
    mean = ch_sum / count
    var = jnp.maximum(ch_ssq / count - mean * mean, 0.0)
    gamma_p = jnp.pad(gamma.astype(jnp.float32), (0, C2p - C2))
    beta_p = jnp.pad(beta.astype(jnp.float32), (0, C2p - C2))
    scale = gamma_p / jnp.sqrt(var + eps)
    bias = beta_p - mean * scale

    # ---- Pallas pass 2: row-tiled folded BN + single-exp Mish, bf16 lane-dense stores ----
    bn_call = pl.pallas_call(
        functools.partial(_bn_act_kernel, apply_mish=act),
        out_shape=jax.ShapeDtypeStruct((Mp, C2p), jnp.bfloat16),
        grid=(n_blocks,),
        in_specs=[
            pl.BlockSpec((TM, C2p), lambda i: (i, 0)),
            pl.BlockSpec((1, C2p), lambda i: (0, 0)),
            pl.BlockSpec((1, C2p), lambda i: (0, 0)),
        ],
        out_specs=pl.BlockSpec((TM, C2p), lambda i: (i, 0)),
        compiler_params=pltpu.CompilerParams(
            dimension_semantics=("parallel",),
            vmem_limit_bytes=40 * 1024 * 1024,
        ),
    )
    out = bn_call(y_bf16, scale.reshape(1, C2p), bias.reshape(1, C2p))

    # Slice / reshape / transpose in bf16 (half the epilogue bytes), cast back at the end.
    out = out[:M, :C2].reshape(N, Hout, Wout, C2)
    return jnp.transpose(out, (0, 3, 1, 2)).astype(x_nchw.dtype)   # back to NCHW


def _reference(x_nchw, weight, gamma, beta, k, s, eps=1e-5):
    """Pure-JAX f32 reference: conv (im2col matmul) -> train-mode BN -> exact Mish."""
    p = autopad(k)
    N, C1, H, W = x_nchw.shape
    C2 = weight.shape[0]
    Hout = (H + 2 * p - k) // s + 1
    Wout = (W + 2 * p - k) // s + 1
    x = jnp.transpose(x_nchw, (0, 2, 3, 1)).astype(jnp.float32)
    xp = jnp.pad(x, ((0, 0), (p, p), (p, p), (0, 0)))
    patches = _extract_patches(xp, k, Hout, Wout, s).reshape(N * Hout * Wout, k * k * C1)
    w_mat = jnp.transpose(weight, (2, 3, 1, 0)).astype(jnp.float32).reshape(k * k * C1, C2)
    y = patches @ w_mat
    mean = jnp.mean(y, axis=0)
    var = jnp.mean((y - mean) ** 2, axis=0)
    z = (y - mean) / jnp.sqrt(var + eps) * gamma + beta
    out = z * jnp.tanh(jnp.log1p(jnp.exp(z)))
    return jnp.transpose(out.reshape(N, Hout, Wout, C2), (0, 3, 1, 2))


if __name__ == "__main__":
    key = jax.random.PRNGKey(0)
    k1, k2, k3, k4 = jax.random.split(key, 4)

    N, C1, H, W = 2, 4, 16, 16    # small test shape
    C2, K = 8, 3                  # Conv(c1=4, c2=8, k=3, s=1)

    x = jax.random.normal(k1, (N, C1, H, W), jnp.float32)
    conv_weight = 0.1 * jax.random.normal(k2, (C2, C1, K, K), jnp.float32)
    bn_gamma = 1.0 + 0.1 * jax.random.normal(k3, (C2,), jnp.float32)
    bn_beta = 0.1 * jax.random.normal(k4, (C2,), jnp.float32)

    out = conv_bn_mish(x, conv_weight, bn_gamma, bn_beta, k=K, s=1)
    out = jax.block_until_ready(out)
    assert out.shape == (N, C2, H, W), out.shape
    assert bool(jnp.all(jnp.isfinite(out)))

    ref = _reference(x, conv_weight, bn_gamma, bn_beta, K, 1)
    max_err = float(jnp.max(jnp.abs(out - ref)))
    assert max_err < 0.1, f"max abs err vs reference: {max_err}"

    print("KERNEL_OK")
</pallas_src>

<mosaic_0001>
module attributes {stable_mosaic.version = 11 : i64} {
  func.func @_conv_stats_kernel(%arg0: i32, %arg1: memref<512x128xbf16, #tpu.memory_space<vmem>>, %arg2: memref<128x128xbf16, #tpu.memory_space<vmem>>, %arg3: memref<512x128xbf16, #tpu.memory_space<vmem>>, %arg4: memref<1x1x128xf32, #tpu.memory_space<vmem>>, %arg5: memref<1x1x128xf32, #tpu.memory_space<vmem>>) attributes {dimension_semantics = [#tpu.dimension_semantics<parallel>], iteration_bounds = array<i64: 1>, scalar_prefetch = 0 : i64, scratch_operands = 0 : i64, tpu.core_type = #tpu.core_type<tc>, window_params = [{transform_indices = @transform_0, window_bounds = array<i64: 512, 128>}, {pipeline_mode = #tpu.pipeline_mode<synchronous>, transform_indices = @transform_1, window_bounds = array<i64: 128, 128>}, {transform_indices = @transform_2, window_bounds = array<i64: 512, 128>}, {transform_indices = @transform_3, window_bounds = array<i64: 1, 1, 128>}, {transform_indices = @transform_4, window_bounds = array<i64: 1, 1, 128>}]} {
    %c0 = arith.constant 0 : index
    %c0_0 = arith.constant 0 : index
    %0 = vector.load %arg1[%c0, %c0_0] : memref<512x128xbf16, #tpu.memory_space<vmem>>, vector<512x128xbf16>
    %c0_1 = arith.constant 0 : index
    %c0_2 = arith.constant 0 : index
    %1 = vector.load %arg2[%c0_1, %c0_2] : memref<128x128xbf16, #tpu.memory_space<vmem>>, vector<128x128xbf16>
    %cst = arith.constant dense<0.000000e+00> : vector<512x128xf32>
    %2 = tpu.matmul %0, %1, %cst {dimension_numbers = #tpu.dot_dimension_numbers<[1], [0], [0], [1], [0, 0, 1, 1], [], []>} : vector<512x128xbf16>, vector<128x128xbf16>, vector<512x128xf32> -> vector<512x128xf32>
    %3 = arith.truncf %2 : vector<512x128xf32> to vector<512x128xbf16>
    %c0_3 = arith.constant 0 : index
    %c0_4 = arith.constant 0 : index
    %4 = vector.load %arg3[%c0_3, %c0_4] : memref<512x128xbf16, #tpu.memory_space<vmem>>, vector<512x128xbf16>
    tpu.vector_store %arg3[%c0_3, %c0_4], %3 {strides = array<i32>} : memref<512x128xbf16, #tpu.memory_space<vmem>>, vector<512x128xbf16>,
    %cst_5 = arith.constant dense<0.000000e+00> : vector<128xf32>
    %5 = vector.multi_reduction <add>, %2, %cst_5 [0] : vector<512x128xf32> to vector<128xf32>
    %6 = vector.shape_cast %5 : vector<128xf32> to vector<1x128xf32>
    %7 = vector.shape_cast %6 : vector<1x128xf32> to vector<1x1x128xf32>
    %c0_6 = arith.constant 0 : index
    %c0_7 = arith.constant 0 : index
    %c0_8 = arith.constant 0 : index
    %8 = vector.load %arg4[%c0_6, %c0_7, %c0_8] : memref<1x1x128xf32, #tpu.memory_space<vmem>>, vector<1x1x128xf32>
    tpu.vector_store %arg4[%c0_6, %c0_7, %c0_8], %7 {strides = array<i32>} : memref<1x1x128xf32, #tpu.memory_space<vmem>>, vector<1x1x128xf32>,
    %9 = arith.mulf %2, %2 : vector<512x128xf32>
    %cst_9 = arith.constant dense<0.000000e+00> : vector<128xf32>
    %10 = vector.multi_reduction <add>, %9, %cst_9 [0] : vector<512x128xf32> to vector<128xf32>
    %11 = vector.shape_cast %10 : vector<128xf32> to vector<1x128xf32>
    %12 = vector.shape_cast %11 : vector<1x128xf32> to vector<1x1x128xf32>
    %c0_10 = arith.constant 0 : index
    %c0_11 = arith.constant 0 : index
    %c0_12 = arith.constant 0 : index
    %13 = vector.load %arg5[%c0_10, %c0_11, %c0_12] : memref<1x1x128xf32, #tpu.memory_space<vmem>>, vector<1x1x128xf32>
    tpu.vector_store %arg5[%c0_10, %c0_11, %c0_12], %12 {strides = array<i32>} : memref<1x1x128xf32, #tpu.memory_space<vmem>>, vector<1x1x128xf32>,
    return
  }
  func.func @transform_0(%arg0: i32) -> (i32, i32) {
    %c0_i32 = arith.constant 0 : i32
    %c0_i32_0 = arith.constant 0 : i32
    return %arg0, %c0_i32 : i32, i32
  }
  func.func @transform_1(%arg0: i32) -> (i32, i32) {
    %c0_i32 = arith.constant 0 : i32
    %c0_i32_0 = arith.constant 0 : i32
    %c0_i32_1 = arith.constant 0 : i32
    return %c0_i32, %c0_i32_0 : i32, i32
  }
  func.func @transform_2(%arg0: i32) -> (i32, i32) {
    %c0_i32 = arith.constant 0 : i32
    %c0_i32_0 = arith.constant 0 : i32
    return %arg0, %c0_i32 : i32, i32
  }
  func.func @transform_3(%arg0: i32) -> (i32, i32, i32) {
    %c0_i32 = arith.constant 0 : i32
    %c0_i32_0 = arith.constant 0 : i32
    %c0_i32_1 = arith.constant 0 : i32
    return %arg0, %c0_i32, %c0_i32_0 : i32, i32, i32
  }
  func.func @transform_4(%arg0: i32) -> (i32, i32, i32) {
    %c0_i32 = arith.constant 0 : i32
    %c0_i32_0 = arith.constant 0 : i32
    %c0_i32_1 = arith.constant 0 : i32
    return %arg0, %c0_i32, %c0_i32_0 : i32, i32, i32
  }
}

</mosaic_0001>

<bundles_post_ra>
// kernel: tpu_custom_call.1
= control target key start
LH: loop header
LB: loop body
LE: loop exit
PB: predicated region body
PF: predicated region fallthrough
CT: control target
= control target key end

     0   :  { %10 = vsyncpa [#allocation3], 0  ;;  %s1820_s0 = inlined_call_operand.hbm [shape: bf16[512,128], index: 0, kind: input, shape index: {}]   ;;  %s1821_s1 = inlined_call_operand.hbm [shape: bf16[128,128], index: 1, kind: input, shape index: {}]   ;;  %s1822_s2 = inlined_call_operand.hbm [shape: bf16[512,128], index: 2, kind: output, shape index: {0}]   ;;  %s1823_s3 = inlined_call_operand.hbm [shape: f32[1,1,128], index: 3, kind: output, shape index: {1}]   ;;  %s1824_s4 = inlined_call_operand.hbm [shape: f32[1,1,128], index: 4, kind: output, shape index: {2}]  }
   0x1   :  { %11 = vsyncpa [#allocation6], 0 }
   0x2   :  { %12 = vsyncpa [#allocation4], 0 }
   0x3   :  { %13 = vsyncpa [#allocation9], 0  ;;  %s18_s17 = sshll.u32 %s1820_s0, 4  ;;  %s1470_s18 = smov [#allocation2]   ;;  %s19_s17 = int_to_ptr.hbm [resolvable:$true] %s18_s17 }
   0x4   :  { %s20_s19 = sshll.u32 %s1470_s18, 4  ;;  %s31_s22 = sshll.u32 %s1821_s1, 4  ;;  %s21_s19 = int_to_ptr.vmem [resolvable:$true] %s20_s19  ;;  %s32_s22 = int_to_ptr.hbm [resolvable:$true] %s31_s22 }
   0x5   :  { %s1471_s23 = smov 64   ;;  %s1472_s24 = smov 4  }
   0x6   :  { %26 = dma.hbm_to_vmem [thread:$0]  %s19_s17, 4096, %s21_s19, [#allocation3], %s1471_s23, %s1471_s23, %s1472_s24  }
   0x7   :  { %s1473_s25 = smov [#allocation5]  }
   0x8   :  { %s33_s26 = sshll.u32 %s1473_s25, 4  ;;  %s34_s26 = int_to_ptr.vmem [resolvable:$true] %s33_s26 }
   0x9   :  { %39 = dma.hbm_to_vmem [thread:$0]  %s32_s22, 1024, %s34_s26, [#allocation6], %s1471_s23, %s1471_s23, %s1472_s24  }
   0xa   :  { %1462 = dma.done.wait [#allocation3], 4096  }
   0xb   :  { %1463 = vsyncadd [#allocation3], 4294963200 }
   0xc   :  { %1464 = dma.done.wait [#allocation6], 1024  }
   0xd   :  { %1465 = vsyncadd [#allocation6], 4294966272  ;;  %v1119_v0 = vld [vmem:[#allocation5 + $0x38] sm:$0xff]  ;;  %v1118_v1 = vld [vmem:[#allocation5 + $0x30] sm:$0xff]  ;;  %s1474_s0 = smov [#allocation7]   ;;  %s875_s29 = sshll.u32 %s1822_s2, 4  ;;  %s876_s29 = int_to_ptr.hbm [resolvable:$true] %s875_s29 }
   0xe   :  { %368 = vmatpush.bf16.msra.mxu0 %v1119_v0  ;;  %1311 = vmatpush.bf16.msra.mxu1 %v1119_v0  ;;  %v1117_v2 = vld [vmem:[#allocation5 + $0x28] sm:$0xff]  ;;  %v1116_v3 = vld [vmem:[#allocation5 + $0x20] sm:$0xff]  ;;  %v1115_v4 = vld [vmem:[#allocation5 + $0x18] sm:$0xff]  ;;  %s873_s1 = sshll.u32 %s1474_s0, 4  ;;  %s1475_s2 = smov [#allocation8]   ;;  %s874_s1 = int_to_ptr.vmem [resolvable:$true] %s873_s1 }
   0xf   :  { %1312 = vmatpush.bf16.msra.mxu2 %v1119_v0  ;;  %1313 = vmatpush.bf16.msra.mxu3 %v1119_v0  ;;  %v1114_v5 = vld [vmem:[#allocation5 + $0x10] sm:$0xff]  ;;  %v1113_v6 = vld [vmem:[#allocation5 + $0x8] sm:$0xff]  ;;  %v1112_v7 = vld [vmem:[#allocation5] sm:$0xff]  ;;  %s887_s30 = sshll.u32 %s1475_s2, 4  ;;  %s889_s7 = sshll.u32 %s1823_s3, 4  ;;  %s888_s30 = int_to_ptr.vmem [resolvable:$true] %s887_s30  ;;  %s890_s7 = int_to_ptr.hbm [resolvable:$true] %s889_s7 }
  0x10   :  { %v1080_v8 = vld [vmem:[#allocation2] sm:$0xff]  ;;  %v1081_v10 = vld [vmem:[#allocation2 + $0x8] sm:$0xff]  ;;  %v1082_v13 = vld [vmem:[#allocation2 + $0x10] sm:$0xff]  ;;  %s1476_s8 = smov [#allocation10]   ;;  %s900_s12 = sshll.u32 %s1824_s4, 4  ;;  %s901_s12 = int_to_ptr.hbm [resolvable:$true] %s900_s12 }
  0x11   :  { %v1088_v9 = vld [vmem:[#allocation2 + $0x40] sm:$0xff]  ;;  %v1089_v11 = vld [vmem:[#allocation2 + $0x48] sm:$0xff]  ;;  %v1090_v14 = vld [vmem:[#allocation2 + $0x50] sm:$0xff]  ;;  %s898_s9 = sshll.u32 %s1476_s8, 4  ;;  %s899_s9 = int_to_ptr.vmem [resolvable:$true] %s898_s9 }
  0x12   :  { %369 = vmatpush.bf16.msra.mxu0 %v1118_v1  ;;  %1314 = vmatpush.bf16.msra.mxu1 %v1118_v1  ;;  %v1096_v12 = vld [vmem:[#allocation2 + $0x80] sm:$0xff]  ;;  %v1097_v15 = vld [vmem:[#allocation2 + $0x88] sm:$0xff]  ;;  %v1083_v16 = vld [vmem:[#allocation2 + $0x18] sm:$0xff] }
  0x13   :  { %1315 = vmatpush.bf16.msra.mxu2 %v1118_v1  ;;  %1316 = vmatpush.bf16.msra.mxu3 %v1118_v1  ;;  %v1091_v17 = vld [vmem:[#allocation2 + $0x58] sm:$0xff]  ;;  %v1098_v18 = vld [vmem:[#allocation2 + $0x90] sm:$0xff]  ;;  %v1104_v19 = vld [vmem:[#allocation2 + $0xc0] sm:$0xff] }
  0x14   :  { %v1084_v20 = vld [vmem:[#allocation2 + $0x20] sm:$0xff]  ;;  %v1099_v22 = vld [vmem:[#allocation2 + $0x98] sm:$0xff]  ;;  %v1105_v23 = vld [vmem:[#allocation2 + $0xc8] sm:$0xff] }
  0x15   :  { %v1092_v21 = vld [vmem:[#allocation2 + $0x60] sm:$0xff]  ;;  %v1085_v24 = vld [vmem:[#allocation2 + $0x28] sm:$0xff]  ;;  %v1106_v27 = vld [vmem:[#allocation2 + $0xd0] sm:$0xff] }
  0x16   :  { %370 = vmatpush.bf16.msra.mxu0 %v1117_v2  ;;  %1317 = vmatpush.bf16.msra.mxu1 %v1117_v2  ;;  %v1093_v25 = vld [vmem:[#allocation2 + $0x68] sm:$0xff]  ;;  %v1100_v26 = vld [vmem:[#allocation2 + $0xa0] sm:$0xff]  ;;  %v1086_v28 = vld [vmem:[#allocation2 + $0x30] sm:$0xff] }
  0x17   :  { %1318 = vmatpush.bf16.msra.mxu2 %v1117_v2  ;;  %1319 = vmatpush.bf16.msra.mxu3 %v1117_v2  ;;  %v1094_v29 = vld [vmem:[#allocation2 + $0x70] sm:$0xff]  ;;  %v1101_v30 = vld [vmem:[#allocation2 + $0xa8] sm:$0xff]  ;;  %v1107_v31 = vld [vmem:[#allocation2 + $0xd8] sm:$0xff] }
  0x18   :  { %v1087_v32 = vld [vmem:[#allocation2 + $0x38] sm:$0xff]  ;;  %v1102_v34 = vld [vmem:[#allocation2 + $0xb0] sm:$0xff]  ;;  %v1108_v35 = vld [vmem:[#allocation2 + $0xe0] sm:$0xff] }
  0x19   :  { %v1095_v33 = vld [vmem:[#allocation2 + $0x78] sm:$0xff]  ;;  %v1109_v39 = vld [vmem:[#allocation2 + $0xe8] sm:$0xff]  ;;  %v1110_v53 = vld [vmem:[#allocation2 + $0xf0] sm:$0xff] }
  0x1a   :  { %371 = vmatpush.bf16.msra.mxu0 %v1116_v3  ;;  %1320 = vmatpush.bf16.msra.mxu1 %v1116_v3  ;;  %v1103_v38 = vld [vmem:[#allocation2 + $0xb8] sm:$0xff] }
  0x1b   :  { %1321 = vmatpush.bf16.msra.mxu2 %v1116_v3  ;;  %1322 = vmatpush.bf16.msra.mxu3 %v1116_v3 }
  0x1e   :  { %372 = vmatpush.bf16.msra.mxu0 %v1115_v4  ;;  %1323 = vmatpush.bf16.msra.mxu1 %v1115_v4 }
  0x1f   :  { %1324 = vmatpush.bf16.msra.mxu2 %v1115_v4  ;;  %1325 = vmatpush.bf16.msra.mxu3 %v1115_v4 }
  0x22   :  { %373 = vmatpush.bf16.msra.mxu0 %v1114_v5  ;;  %1326 = vmatpush.bf16.msra.mxu1 %v1114_v5 }
  0x23   :  { %1327 = vmatpush.bf16.msra.mxu2 %v1114_v5  ;;  %1328 = vmatpush.bf16.msra.mxu3 %v1114_v5  ;;  %v1111_v5 = vld [vmem:[#allocation2 + $0xf8] sm:$0xff] }
  0x26   :  { %374 = vmatpush.bf16.msra.mxu0 %v1113_v6  ;;  %1329 = vmatpush.bf16.msra.mxu1 %v1113_v6 }
  0x27   :  { %1330 = vmatpush.bf16.msra.mxu2 %v1113_v6  ;;  %1331 = vmatpush.bf16.msra.mxu3 %v1113_v6 }
  0x2a   :  { %375 = vmatpush.bf16.msra.mxu0 %v1112_v7  ;;  %1332 = vmatpush.bf16.msra.mxu1 %v1112_v7 }
  0x2b   :  { %1333 = vmatpush.bf16.msra.mxu2 %v1112_v7  ;;  %1334 = vmatpush.bf16.msra.mxu3 %v1112_v7 }
  0x2d   :  { %376 = vmatmul.bf16.vlgmr.msra.gmra.mxu0 %v1080_v8  ;;  %416 = vmatmul.bf16.vlgmr.msra.gmra.mxu1 %v1088_v9 }
  0x2e   :  { %456 = vmatmul.bf16.vlgmr.msra.gmra.mxu2 %v1096_v12  ;;  %496 = vmatmul.bf16.vlgmr.msra.gmra.mxu3 %v1104_v19 }
  0x3d   :  { %381 = vmatmul.bf16.gmra.mxu0 %v1081_v10  ;;  %421 = vmatmul.bf16.gmra.mxu1 %v1089_v11 }
  0x3e   :  { %461 = vmatmul.bf16.gmra.mxu2 %v1097_v15  ;;  %501 = vmatmul.bf16.gmra.mxu3 %v1105_v23 }
  0x4d   :  { %386 = vmatmul.bf16.gmra.mxu0 %v1082_v13  ;;  %426 = vmatmul.bf16.gmra.mxu1 %v1090_v14 }
  0x4e   :  { %466 = vmatmul.bf16.gmra.mxu2 %v1098_v18  ;;  %506 = vmatmul.bf16.gmra.mxu3 %v1106_v27 }
  0x5d   :  { %391 = vmatmul.bf16.gmra.mxu0 %v1083_v16  ;;  %431 = vmatmul.bf16.gmra.mxu1 %v1091_v17 }
  0x5e   :  { %471 = vmatmul.bf16.gmra.mxu2 %v1099_v22  ;;  %511 = vmatmul.bf16.gmra.mxu3 %v1107_v31 }
  0x6d   :  { %396 = vmatmul.bf16.gmra.mxu0 %v1084_v20  ;;  %436 = vmatmul.bf16.gmra.mxu1 %v1092_v21 }
  0x6e   :  { %476 = vmatmul.bf16.gmra.mxu2 %v1100_v26  ;;  %516 = vmatmul.bf16.gmra.mxu3 %v1108_v35 }
  0x7d   :  { %401 = vmatmul.bf16.gmra.mxu0 %v1085_v24  ;;  %441 = vmatmul.bf16.gmra.mxu1 %v1093_v25 }
  0x7e   :  { %481 = vmatmul.bf16.gmra.mxu2 %v1101_v30  ;;  %521 = vmatmul.bf16.gmra.mxu3 %v1109_v39 }
  0x8d   :  { %406 = vmatmul.bf16.gmra.mxu0 %v1086_v28  ;;  %446 = vmatmul.bf16.gmra.mxu1 %v1094_v29 }
  0x8e   :  { %486 = vmatmul.bf16.gmra.mxu2 %v1102_v34  ;;  %526 = vmatmul.bf16.gmra.mxu3 %v1110_v53 }
  0x9d   :  { %411 = vmatmul.bf16.gmra.mxu0 %v1087_v32  ;;  %451 = vmatmul.bf16.gmra.mxu1 %v1095_v33 }
  0x9e   :  { %491 = vmatmul.bf16.gmra.mxu2 %v1103_v38  ;;  %531 = vmatmul.bf16.gmra.mxu3 %v1111_v5 }
  0xaa   :  { %v377_v36 = vpop.f32.mrf.mxu0  ;;  %v1514_v37 = vpop.f32.mrf.mxu1 }
  0xab   :  { %v735_v40 = vmul.f32 %v377_v36, %v377_v36 }
  0xb1   :  { %v1526_v60 = vpop.f32.mrf.mxu2  ;;  %v1556_v20 = vpop.f32.mrf.mxu3 }
  0xb2   :  { %v379_v41 = vpop.f32.mrf.mxu0  ;;  %v1516_v42 = vpop.f32.mrf.mxu1 }
  0xb3   :  { %v1123_v43 = vpack.c.bf16 %v379_v41, %v377_v36  ;;  %v665_v44 = vadd.f32 %v379_v41, %v377_v36  ;;  %v736_v45 = vmul.f32 %v379_v41, %v379_v41  ;;  %v1163_v46 = vpack.c.bf16 %v1516_v42, %v1514_v37 }
  0xb5   :  { %1124 = vst [vmem:[#allocation7] sm:$0xff] %v1123_v43   ;;  %v799_v47 = vadd.f32 %v736_v45, %v735_v40 }
  0xb6   :  { %1287 = vst [vmem:[#allocation7 + $0x40] sm:$0xff] %v1163_v46  }
  0xb9   :  { %v1532_v2 = vpop.f32.mrf.mxu2  ;;  %v1562_v24 = vpop.f32.mrf.mxu3 }
  0xba   :  { %v382_v48 = vpop.f32.mrf.mxu0  ;;  %v1520_v49 = vpop.f32.mrf.mxu1  ;;  %v1203_v3 = vpack.c.bf16 %v1532_v2, %v1526_v60  ;;  %v1243_v26 = vpack.c.bf16 %v1562_v24, %v1556_v20 }
  0xbb   :  { %v666_v50 = vadd.f32 %v665_v44, %v382_v48  ;;  %v737_v51 = vmul.f32 %v382_v48, %v382_v48 }
  0xbc   :  { %1295 = vst [vmem:[#allocation7 + $0x80] sm:$0xff] %v1203_v3  }
  0xbd   :  { %v800_v52 = vadd.f32 %v799_v47, %v737_v51  ;;  %1303 = vst [vmem:[#allocation7 + $0xc0] sm:$0xff] %v1243_v26  }
  0xc1   :  { %v1542_v10 = vpop.f32.mrf.mxu2  ;;  %v1574_v32 = vpop.f32.mrf.mxu3 }
  0xc2   :  { %v384_v54 = vpop.f32.mrf.mxu0  ;;  %v1522_v55 = vpop.f32.mrf.mxu1 }
  0xc3   :  { %v1128_v56 = vpack.c.bf16 %v384_v54, %v382_v48  ;;  %v667_v57 = vadd.f32 %v666_v50, %v384_v54  ;;  %v738_v58 = vmul.f32 %v384_v54, %v384_v54  ;;  %v1168_v59 = vpack.c.bf16 %v1522_v55, %v1520_v49 }
  0xc5   :  { %1280 = vst [vmem:[#allocation7 + $0x8] sm:$0xff] %v1128_v56   ;;  %v801_v61 = vadd.f32 %v800_v52, %v738_v58 }
  0xc6   :  { %1288 = vst [vmem:[#allocation7 + $0x48] sm:$0xff] %v1168_v59  }
  0xc9   :  { %v1546_v13 = vpop.f32.mrf.mxu2  ;;  %v1580_v36 = vpop.f32.mrf.mxu3 }
  0xca   :  { %v387_v62 = vpop.f32.mrf.mxu0  ;;  %v1528_v63 = vpop.f32.mrf.mxu1  ;;  %v1208_v14 = vpack.c.bf16 %v1546_v13, %v1542_v10  ;;  %v1248_v39 = vpack.c.bf16 %v1580_v36, %v1574_v32 }
  0xcb   :  { %v1530_v0 = vadd.f32 %v667_v57, %v387_v62  ;;  %v739_v1 = vmul.f32 %v387_v62, %v387_v62 }
  0xcc   :  { %1296 = vst [vmem:[#allocation7 + $0x88] sm:$0xff] %v1208_v14  }
  0xcd   :  { %v1536_v4 = vadd.f32 %v801_v61, %v739_v1  ;;  %1304 = vst [vmem:[#allocation7 + $0xc8] sm:$0xff] %v1248_v39  }
  0xd1   :  { %v1554_v19 = vpop.f32.mrf.mxu2  ;;  %v1592_v46 = vpop.f32.mrf.mxu3 }
  0xd2   :  { %v389_v6 = vpop.f32.mrf.mxu0  ;;  %v1538_v7 = vpop.f32.mrf.mxu1 }
  0xd3   :  { %v1133_v8 = vpack.c.bf16 %v389_v6, %v387_v62  ;;  %v1173_v9 = vpack.c.bf16 %v1538_v7, %v1528_v63  ;;  %v740_v52 = vmul.f32 %v389_v6, %v389_v6  ;;  %v669_v57 = vadd.f32 %v1530_v0, %v389_v6 }
  0xd5   :  { %1281 = vst [vmem:[#allocation7 + $0x10] sm:$0xff] %v1133_v8   ;;  %v803_v58 = vadd.f32 %v1536_v4, %v740_v52 }
  0xd6   :  { %1289 = vst [vmem:[#allocation7 + $0x50] sm:$0xff] %v1173_v9  }
  0xd9   :  { %v1560_v23 = vpop.f32.mrf.mxu2  ;;  %v1598_v51 = vpop.f32.mrf.mxu3 }
  0xda   :  { %v392_v11 = vpop.f32.mrf.mxu0  ;;  %v1544_v12 = vpop.f32.mrf.mxu1  ;;  %v1213_v25 = vpack.c.bf16 %v1560_v23, %v1554_v19  ;;  %v1253_v54 = vpack.c.bf16 %v1598_v51, %v1592_v46 }
  0xdb   :  { %v741_v56 = vmul.f32 %v392_v11, %v392_v11  ;;  %v670_v61 = vadd.f32 %v669_v57, %v392_v11 }
  0xdc   :  { %1297 = vst [vmem:[#allocation7 + $0x90] sm:$0xff] %v1213_v25  }
  0xdd   :  { %1305 = vst [vmem:[#allocation7 + $0xd0] sm:$0xff] %v1253_v54   ;;  %v804_v62 = vadd.f32 %v803_v58, %v741_v56 }
  0xe1   :  { %v1572_v31 = vpop.f32.mrf.mxu2 }
  0xe2   :  { %v394_v15 = vpop.f32.mrf.mxu0  ;;  %v1550_v16 = vpop.f32.mrf.mxu1 }
  0xe3   :  { %v1138_v17 = vpack.c.bf16 %v394_v15, %v392_v11  ;;  %v1178_v18 = vpack.c.bf16 %v1550_v16, %v1544_v12  ;;  %v742_v59 = vmul.f32 %v394_v15, %v394_v15  ;;  %v671_v8 = vadd.f32 %v670_v61, %v394_v15 }
  0xe5   :  { %1282 = vst [vmem:[#allocation7 + $0x18] sm:$0xff] %v1138_v17   ;;  %v805_v0 = vadd.f32 %v804_v62, %v742_v59 }
  0xe6   :  { %1290 = vst [vmem:[#allocation7 + $0x58] sm:$0xff] %v1178_v18   ;;  %v1612_v18 = vpop.f32.mrf.mxu3 }
  0xe9   :  { %v1578_v35 = vpop.f32.mrf.mxu2 }
  0xea   :  { %v397_v21 = vpop.f32.mrf.mxu0  ;;  %v1558_v22 = vpop.f32.mrf.mxu1  ;;  %v1218_v38 = vpack.c.bf16 %v1578_v35, %v1572_v31 }
  0xeb   :  { %v743_v1 = vmul.f32 %v397_v21, %v397_v21  ;;  %v672_v25 = vadd.f32 %v671_v8, %v397_v21 }
  0xec   :  { %1298 = vst [vmem:[#allocation7 + $0x98] sm:$0xff] %v1218_v38  }
  0xed   :  { %v806_v4 = vadd.f32 %v805_v0, %v743_v1 }
  0xee   :  { %v1618_v54 = vpop.f32.mrf.mxu3 }
  0xf1   :  { %v1590_v45 = vpop.f32.mrf.mxu2 }
  0xf2   :  { %v399_v27 = vpop.f32.mrf.mxu0  ;;  %v1568_v28 = vpop.f32.mrf.mxu1 }
  0xf3   :  { %v1143_v29 = vpack.c.bf16 %v399_v27, %v397_v21  ;;  %v1183_v30 = vpack.c.bf16 %v1568_v28, %v1558_v22  ;;  %v744_v6 = vmul.f32 %v399_v27, %v399_v27  ;;  %v673_v26 = vadd.f32 %v672_v25, %v399_v27 }
  0xf4   :  { %v1258_v27 = vpack.c.bf16 %v1618_v54, %v1612_v18 }
  0xf5   :  { %1283 = vst [vmem:[#allocation7 + $0x20] sm:$0xff] %v1143_v29   ;;  %v807_v29 = vadd.f32 %v806_v4, %v744_v6 }
  0xf6   :  { %1291 = vst [vmem:[#allocation7 + $0x60] sm:$0xff] %v1183_v30  }
  0xf7   :  { %1306 = vst [vmem:[#allocation7 + $0xd8] sm:$0xff] %v1258_v27  }
  0xf9   :  { %v1596_v50 = vpop.f32.mrf.mxu2 }
  0xfa   :  { %v402_v33 = vpop.f32.mrf.mxu0  ;;  %v1576_v34 = vpop.f32.mrf.mxu1  ;;  %v1223_v53 = vpack.c.bf16 %v1596_v50, %v1590_v45 }
  0xfb   :  { %v745_v11 = vmul.f32 %v402_v33, %v402_v33  ;;  %v674_v38 = vadd.f32 %v673_v26, %v402_v33 }
  0xfc   :  { %1299 = vst [vmem:[#allocation7 + $0xa0] sm:$0xff] %v1223_v53  }
  0xfd   :  { %v808_v15 = vadd.f32 %v807_v29, %v745_v11  ;;  %v752_v29 = vmul.f32 %v1516_v42, %v1516_v42 }
 0x101   :  { %v1610_v17 = vpop.f32.mrf.mxu2 }
 0x102   :  { %v404_v40 = vpop.f32.mrf.mxu0  ;;  %v1586_v41 = vpop.f32.mrf.mxu1 }
 0x103   :  { %v1148_v43 = vpack.c.bf16 %v404_v40, %v402_v33  ;;  %v1188_v44 = vpack.c.bf16 %v1586_v41, %v1576_v34  ;;  %v746_v30 = vmul.f32 %v404_v40, %v404_v40  ;;  %v675_v52 = vadd.f32 %v674_v38, %v404_v40 }
 0x105   :  { %1284 = vst [vmem:[#allocation7 + $0x28] sm:$0xff] %v1148_v43   ;;  %v809_v56 = vadd.f32 %v808_v15, %v746_v30  ;;  %v753_v15 = vmul.f32 %v1520_v49, %v1520_v49 }
 0x106   :  { %1292 = vst [vmem:[#allocation7 + $0x68] sm:$0xff] %v1188_v44  }
 0x109   :  { %v1616_v53 = vpop.f32.mrf.mxu2 }
 0x10a   :  { %v407_v47 = vpop.f32.mrf.mxu0  ;;  %v1594_v48 = vpop.f32.mrf.mxu1  ;;  %v1228_v57 = vpack.c.bf16 %v1616_v53, %v1610_v17 }
 0x10b   :  { %v747_v39 = vmul.f32 %v407_v47, %v407_v47  ;;  %v676_v58 = vadd.f32 %v675_v52, %v407_v47  ;;  %v754_v52 = vmul.f32 %v1522_v55, %v1522_v55 }
 0x10c   :  { %1300 = vst [vmem:[#allocation7 + $0xa8] sm:$0xff] %v1228_v57  }
 0x10d   :  { %v810_v33 = vadd.f32 %v809_v56, %v747_v39 }
 0x111   :  { %v1628_v4 = vpop.f32.mrf.mxu2 }
 0x112   :  { %v409_v3 = vpop.f32.mrf.mxu0  ;;  %v1606_v5 = vpop.f32.mrf.mxu1 }
 0x113   :  { %v1153_v9 = vpack.c.bf16 %v409_v3, %v407_v47  ;;  %v1193_v14 = vpack.c.bf16 %v1606_v5, %v1594_v48  ;;  %v748_v21 = vmul.f32 %v409_v3, %v409_v3  ;;  %v677_v61 = vadd.f32 %v676_v58, %v409_v3  ;;  %v1630_v47 = vpop.f32.mrf.mxu3 }
 0x114   :  { %v751_v3 = vmul.f32 %v1514_v37, %v1514_v37 }
 0x115   :  { %1285 = vst [vmem:[#allocation7 + $0x30] sm:$0xff] %v1153_v9   ;;  %v811_v62 = vadd.f32 %v810_v33, %v748_v21 }
 0x116   :  { %1293 = vst [vmem:[#allocation7 + $0x70] sm:$0xff] %v1193_v14  }
 0x119   :  { %v1644_v21 = vpop.f32.mrf.mxu2 }
 0x11a   :  { %v412_v43 = vpop.f32.mrf.mxu0  ;;  %v1614_v44 = vpop.f32.mrf.mxu1 }
 0x11b   :  { %v749_v59 = vmul.f32 %v412_v43, %v412_v43  ;;  %v678_v40 = vadd.f32 %v677_v61, %v412_v43  ;;  %v1646_v57 = vpop.f32.mrf.mxu3 }
 0x11c   :  { %v1263_v27 = vpack.c.bf16 %v1646_v57, %v1630_v47 }
 0x11d   :  { %v812_v1 = vadd.f32 %v811_v62, %v749_v59  ;;  %v757_v62 = vmul.f32 %v1544_v12, %v1544_v12 }
 0x11e   :  { %1307 = vst [vmem:[#allocation7 + $0xe0] sm:$0xff] %v1263_v27   ;;  %v764_v27 = vmul.f32 %v1606_v5, %v1606_v5 }
 0x122   :  { %v414_v8 = vpop.f32.mrf.mxu0  ;;  %v1624_v9 = vpop.f32.mrf.mxu1 }
 0x123   :  { %v1158_v14 = vpack.c.bf16 %v414_v8, %v412_v43  ;;  %v679_v0 = vadd.f32 %v678_v40, %v414_v8  ;;  %v750_v6 = vmul.f32 %v414_v8, %v414_v8  ;;  %v1198_v25 = vpack.c.bf16 %v1624_v9, %v1614_v44 }
 0x124   :  { %v758_v8 = vmul.f32 %v1550_v16, %v1550_v16 }
 0x125   :  { %1286 = vst [vmem:[#allocation7 + $0x38] sm:$0xff] %v1158_v14   ;;  %v680_v11 = vadd.f32 %v679_v0, %v1514_v37  ;;  %v813_v26 = vadd.f32 %v812_v1, %v750_v6  ;;  %v1664_v0 = vpop.f32.mrf.mxu2  ;;  %v1666_v6 = vpop.f32.mrf.mxu3 }
 0x126   :  { %1294 = vst [vmem:[#allocation7 + $0x78] sm:$0xff] %v1198_v25  }
 0x127   :  { %v681_v30 = vadd.f32 %v680_v11, %v1516_v42  ;;  %v814_v38 = vadd.f32 %v813_v26, %v751_v3  ;;  %v1233_v42 = vpack.c.bf16 %v1644_v21, %v1628_v4  ;;  %v760_v11 = vmul.f32 %v1568_v28, %v1568_v28 }
 0x129   :  { %v682_v39 = vadd.f32 %v681_v30, %v1520_v49  ;;  %v815_v43 = vadd.f32 %v814_v38, %v752_v29  ;;  %v755_v49 = vmul.f32 %v1528_v63, %v1528_v63  ;;  %1301 = vst [vmem:[#allocation7 + $0xb0] sm:$0xff] %v1233_v42   ;;  %v762_v38 = vmul.f32 %v1586_v41, %v1586_v41 }
 0x12b   :  { %v683_v56 = vadd.f32 %v682_v39, %v1522_v55  ;;  %v816_v37 = vadd.f32 %v815_v43, %v753_v15  ;;  %v756_v55 = vmul.f32 %v1538_v7, %v1538_v7 }
 0x12d   :  { %v684_v58 = vadd.f32 %v683_v56, %v1528_v63  ;;  %v817_v33 = vadd.f32 %v816_v37, %v754_v52  ;;  %v1682_v43 = vpop.f32.mrf.mxu3 }
 0x12e   :  { %v1268_v52 = vpack.c.bf16 %v1682_v43, %v1666_v6 }
 0x12f   :  { %v685_v59 = vadd.f32 %v684_v58, %v1538_v7  ;;  %v818_v61 = vadd.f32 %v817_v33, %v755_v49  ;;  %v759_v7 = vmul.f32 %v1558_v22, %v1558_v22  ;;  %v765_v33 = vmul.f32 %v1614_v44, %v1614_v44 }
 0x130   :  { %1308 = vst [vmem:[#allocation7 + $0xe8] sm:$0xff] %v1268_v52   ;;  %v775_v52 = vmul.f32 %v1590_v45, %v1590_v45 }
 0x131   :  { %v819_v40 = vadd.f32 %v818_v61, %v756_v55  ;;  %v686_v1 = vadd.f32 %v685_v59, %v1544_v12 }
 0x133   :  { %v687_v63 = vadd.f32 %v686_v1, %v1550_v16  ;;  %v820_v14 = vadd.f32 %v819_v40, %v757_v62  ;;  %v761_v16 = vmul.f32 %v1576_v34, %v1576_v34  ;;  %v767_v62 = vmul.f32 %v1526_v60, %v1526_v60 }
 0x134   :  { %v768_v1 = vmul.f32 %v1532_v2, %v1532_v2 }
 0x135   :  { %v688_v25 = vadd.f32 %v687_v63, %v1558_v22  ;;  %v821_v3 = vadd.f32 %v820_v14, %v758_v8  ;;  %v1680_v22 = vpop.f32.mrf.mxu2  ;;  %v1700_v61 = vpop.f32.mrf.mxu3  ;;  %v769_v63 = vmul.f32 %v1542_v10, %v1542_v10 }
 0x137   :  { %v689_v12 = vadd.f32 %v688_v25, %v1568_v28  ;;  %v822_v26 = vadd.f32 %v821_v3, %v759_v7  ;;  %v1238_v28 = vpack.c.bf16 %v1680_v22, %v1664_v0  ;;  %v770_v7 = vmul.f32 %v1546_v13, %v1546_v13 }
 0x139   :  { %v690_v29 = vadd.f32 %v689_v12, %v1576_v34  ;;  %v823_v30 = vadd.f32 %v822_v26, %v760_v11  ;;  %v763_v34 = vmul.f32 %v1594_v48, %v1594_v48  ;;  %1302 = vst [vmem:[#allocation7 + $0xb8] sm:$0xff] %v1238_v28  }
 0x13b   :  { %v691_v15 = vadd.f32 %v690_v29, %v1586_v41  ;;  %v824_v39 = vadd.f32 %v823_v30, %v761_v16 }
 0x13d   :  { %v692_v56 = vadd.f32 %v691_v15, %v1594_v48  ;;  %v825_v37 = vadd.f32 %v824_v39, %v762_v38  ;;  %v766_v48 = vmul.f32 %v1624_v9, %v1624_v9  ;;  %v774_v15 = vmul.f32 %v1578_v35, %v1578_v35 }
 0x13f   :  { %v826_v42 = vadd.f32 %v825_v37, %v763_v34  ;;  %v693_v41 = vadd.f32 %v692_v56, %v1606_v5  ;;  %v776_v34 = vmul.f32 %v1596_v50, %v1596_v50 }
 0x141   :  { %v827_v49 = vadd.f32 %v826_v42, %v764_v27  ;;  %v694_v58 = vadd.f32 %v693_v41, %v1614_v44  ;;  %v777_v42 = vmul.f32 %v1610_v17, %v1610_v17  ;;  %v778_v27 = vmul.f32 %v1616_v53, %v1616_v53 }
 0x143   :  { %v828_v55 = vadd.f32 %v827_v49, %v765_v33  ;;  %v695_v59 = vadd.f32 %v694_v58, %v1624_v9 }
 0x145   :  { %v696_v5 = vadd.f32 %v695_v59, %v1526_v60  ;;  %v829_v40 = vadd.f32 %v828_v55, %v766_v48  ;;  %v1714_v60 = vpop.f32.mrf.mxu3  ;;  %v779_v55 = vmul.f32 %v1628_v4, %v1628_v4 }
 0x146   :  { %v1273_v11 = vpack.c.bf16 %v1714_v60, %v1700_v61 }
 0x147   :  { %v697_v8 = vadd.f32 %v696_v5, %v1532_v2  ;;  %v830_v44 = vadd.f32 %v829_v40, %v767_v62  ;;  %v771_v2 = vmul.f32 %v1554_v19, %v1554_v19  ;;  %v781_v40 = vmul.f32 %v1664_v0, %v1664_v0 }
 0x148   :  { %1309 = vst [vmem:[#allocation7 + $0xf0] sm:$0xff] %v1273_v11  }
 0x149   :  { %v698_v14 = vadd.f32 %v697_v8, %v1542_v10  ;;  %v831_v9 = vadd.f32 %v830_v44, %v768_v1  ;;  %v772_v10 = vmul.f32 %v1560_v23, %v1560_v23  ;;  %v782_v8 = vmul.f32 %v1680_v22, %v1680_v22 }
 0x14a   :  { %v783_v44 = vmul.f32 %v1556_v20, %v1556_v20 }
 0x14b   :  { %v699_v25 = vadd.f32 %v698_v14, %v1546_v13  ;;  %v832_v3 = vadd.f32 %v831_v9, %v769_v63  ;;  %v773_v13 = vmul.f32 %v1572_v31, %v1572_v31  ;;  %v784_v14 = vmul.f32 %v1562_v24, %v1562_v24 }
 0x14d   :  { %v700_v12 = vadd.f32 %v699_v25, %v1554_v19  ;;  %v833_v26 = vadd.f32 %v832_v3, %v770_v7  ;;  %v1730_v28 = vpop.f32.mrf.mxu3 }
 0x14f   :  { %v701_v16 = vadd.f32 %v700_v12, %v1560_v23  ;;  %v834_v29 = vadd.f32 %v833_v26, %v771_v2 }
 0x151   :  { %v835_v30 = vadd.f32 %v834_v29, %v772_v10  ;;  %v702_v38 = vadd.f32 %v701_v16, %v1572_v31 }
 0x153   :  { %v703_v39 = vadd.f32 %v702_v38, %v1578_v35  ;;  %v836_v19 = vadd.f32 %v835_v30, %v773_v13 }
 0x155   :  { %v704_v23 = vadd.f32 %v703_v39, %v1590_v45  ;;  %v837_v56 = vadd.f32 %v836_v19, %v774_v15 }
 0x157   :  { %v705_v37 = vadd.f32 %v704_v23, %v1596_v50  ;;  %v838_v31 = vadd.f32 %v837_v56, %v775_v52  ;;  %v1747_v50 = vpop.f32.mrf.mxu3 }
 0x158   :  { %v1278_v58 = vpack.c.bf16 %v1747_v50, %v1730_v28 }
 0x159   :  { %v706_v35 = vadd.f32 %v705_v37, %v1610_v17  ;;  %v839_v41 = vadd.f32 %v838_v31, %v776_v34  ;;  %v794_v34 = vmul.f32 %v1682_v43, %v1682_v43 }
 0x15a   :  { %1310 = vst [vmem:[#allocation7 + $0xf8] sm:$0xff] %v1278_v58   ;;  %v798_v58 = vmul.f32 %v1747_v50, %v1747_v50 }
 0x15b   :  { %v707_v45 = vadd.f32 %v706_v35, %v1616_v53  ;;  %v840_v49 = vadd.f32 %v839_v41, %v777_v42  ;;  %v780_v53 = vmul.f32 %v1644_v21, %v1644_v21  ;;  %881 = dma.vmem_to_hbm [thread:$0]  %s874_s1, 4096, %s876_s29, [#allocation4], %s1471_s23, %s1471_s23, %s1472_s24   ;;  %v795_v42 = vmul.f32 %v1700_v61, %v1700_v61 }
 0x15c   :  { %v796_v41 = vmul.f32 %v1714_v60, %v1714_v60 }
 0x15d   :  { %v841_v17 = vadd.f32 %v840_v49, %v778_v27  ;;  %v708_v33 = vadd.f32 %v707_v45, %v1628_v4  ;;  %v797_v27 = vmul.f32 %v1730_v28, %v1730_v28 }
 0x15f   :  { %v842_v59 = vadd.f32 %v841_v17, %v779_v55  ;;  %v709_v48 = vadd.f32 %v708_v33, %v1644_v21 }
 0x161   :  { %v843_v62 = vadd.f32 %v842_v59, %v780_v53  ;;  %v710_v5 = vadd.f32 %v709_v48, %v1664_v0  ;;  %v785_v0 = vmul.f32 %v1574_v32, %v1574_v32 }
 0x163   :  { %v844_v1 = vadd.f32 %v843_v62, %v781_v40  ;;  %v711_v4 = vadd.f32 %v710_v5, %v1680_v22  ;;  %v786_v22 = vmul.f32 %v1580_v36, %v1580_v36 }
 0x165   :  { %v712_v21 = vadd.f32 %v711_v4, %v1556_v20  ;;  %v845_v63 = vadd.f32 %v844_v1, %v782_v8  ;;  %v787_v20 = vmul.f32 %v1592_v46, %v1592_v46 }
 0x167   :  { %v713_v9 = vadd.f32 %v712_v21, %v1562_v24  ;;  %v846_v7 = vadd.f32 %v845_v63, %v783_v44  ;;  %v788_v24 = vmul.f32 %v1598_v51, %v1598_v51 }
 0x169   :  { %v714_v25 = vadd.f32 %v713_v9, %v1574_v32  ;;  %v847_v3 = vadd.f32 %v846_v7, %v784_v14  ;;  %v789_v32 = vmul.f32 %v1612_v18, %v1612_v18 }
 0x16b   :  { %v715_v11 = vadd.f32 %v714_v25, %v1580_v36  ;;  %v848_v2 = vadd.f32 %v847_v3, %v785_v0  ;;  %v790_v36 = vmul.f32 %v1618_v54, %v1618_v54 }
 0x16d   :  { %v716_v12 = vadd.f32 %v715_v11, %v1592_v46  ;;  %v849_v26 = vadd.f32 %v848_v2, %v786_v22  ;;  %v791_v46 = vmul.f32 %v1630_v47, %v1630_v47 }
 0x16f   :  { %v717_v10 = vadd.f32 %v716_v12, %v1598_v51  ;;  %v850_v16 = vadd.f32 %v849_v26, %v787_v20  ;;  %v792_v51 = vmul.f32 %v1646_v57, %v1646_v57 }
 0x171   :  { %v851_v29 = vadd.f32 %v850_v16, %v788_v24  ;;  %v718_v13 = vadd.f32 %v717_v10, %v1612_v18  ;;  %v793_v18 = vmul.f32 %v1666_v6, %v1666_v6 }
 0x173   :  { %v719_v30 = vadd.f32 %v718_v13, %v1618_v54  ;;  %v852_v38 = vadd.f32 %v851_v29, %v789_v32 }
 0x175   :  { %v720_v15 = vadd.f32 %v719_v30, %v1630_v47  ;;  %v853_v39 = vadd.f32 %v852_v38, %v790_v36 }
 0x177   :  { %v721_v19 = vadd.f32 %v720_v15, %v1646_v57  ;;  %v854_v52 = vadd.f32 %v853_v39, %v791_v46 }
 0x179   :  { %v722_v23 = vadd.f32 %v721_v19, %v1666_v6  ;;  %v855_v56 = vadd.f32 %v854_v52, %v792_v51 }
 0x17b   :  { %v723_v54 = vadd.f32 %v722_v23, %v1682_v43  ;;  %v856_v37 = vadd.f32 %v855_v56, %v793_v18 }
 0x17d   :  { %v857_v47 = vadd.f32 %v856_v37, %v794_v34  ;;  %v724_v31 = vadd.f32 %v723_v54, %v1700_v61 }
 0x17f   :  { %v858_v57 = vadd.f32 %v857_v47, %v795_v42  ;;  %v725_v35 = vadd.f32 %v724_v31, %v1714_v60 }
 0x181   :  { %v859_v6 = vadd.f32 %v858_v57, %v796_v41  ;;  %v726_v45 = vadd.f32 %v725_v35, %v1730_v28 }
 0x183   :  { %v860_v43 = vadd.f32 %v859_v6, %v797_v27  ;;  %v727_v49 = vadd.f32 %v726_v45, %v1747_v50 }
 0x185   :  { %v728_v17 = vrot.slane %v727_v49, 4  ;;  %v861_v61 = vadd.f32 %v860_v43, %v798_v58 }
 0x187   :  { %v729_v33 = vadd.f32 %v728_v17, %v727_v49  ;;  %v862_v55 = vrot.slane %v861_v61, 4 }
 0x189   :  { %v730_v59 = vrot.slane %v729_v33, 2  ;;  %v863_v48 = vadd.f32 %v862_v55, %v861_v61 }
 0x18b   :  { %v731_v53 = vadd.f32 %v730_v59, %v729_v33  ;;  %v864_v60 = vrot.slane %v863_v48, 2 }
 0x18d   :  { %v865_v28 = vadd.f32 %v864_v60, %v863_v48  ;;  %v732_v62 = vrot.slane %v731_v53, 1 }
 0x18f   :  { %v733_v50 = vadd.f32 %v732_v62, %v731_v53  ;;  %v866_v5 = vrot.slane %v865_v28, 1 }
 0x191   :  { %734 = vst [vmem:[#allocation8] sm:$0x1] %v733_v50  ;;  %v867_v40 = vadd.f32 %v866_v5, %v865_v28 }
 0x192   :  { %892 = dma.vmem_to_hbm [thread:$0]  %s888_s30, 16, %s890_s7, [#allocation9]  }
 0x193   :  { %868 = vst [vmem:[#allocation10] sm:$0x1] %v867_v40 }
 0x194   :  { %903 = dma.vmem_to_hbm [thread:$0]  %s899_s9, 16, %s901_s12, [#allocation9]  }
 0x195   :  { %1466 = dma.done.wait [#allocation4], 4096  }
 0x196   :  { %1467 = vsyncadd [#allocation4], 4294963200 }
 0x197   :  { %1468 = dma.done.wait [#allocation9], 32  }
 0x198   :  { %1469 = vsyncadd [#allocation9], 4294967264 }
 0x199   :  { %916 = vsyncpa [#allocation3], 1 }
 0x19a   :  { %917 = vsyncpa [#allocation6], 1 }
 0x19b   :  { %918 = vsyncpa [#allocation4], 1 }
 0x19c   :  { %919 = vsyncpa [#allocation9], 1 }

</bundles_post_ra>
